<compile_context>
chip_gen: v7x
topology: tpu7x:2x2x1
jax: 0.10.0
libtpu: 0.0.40
codegen_flags: <defaults>
</compile_context>

<pallas_src>
import functools

import jax
import jax.numpy as jnp
import numpy as np
from jax.experimental import pallas as pl
from jax.experimental.pallas import tpu as pltpu

EPS = 1e-5


# -----------------------------------------------------------------------------
# Pallas kernel: one grid step == Bb batch elements, full (T, C) per element,
# with C in the lane axis (lane-dense loads, compute and stores).
# -----------------------------------------------------------------------------
def transformer_block_kernel(
    x_ref,                                   # (Bb, T, C)  f32
    w_seq1_ref, b_seq1_ref,                  # (1, mid) f32, (1, mid) f32
    w_seq2_ref, b_seq2_ref,                  # (mid, C) bf16, (1, C) f32
    w_feat1_ref, b_feat1_ref,                # (C, mid) f32, (1, mid) f32
    w_feat2_ref, b_feat2_ref,                # (1, mid) f32, (1, 1) f32
    ln1_w_ref, ln1_b_ref,                    # (1, C) f32, (1, C) f32
    ffn1_w_ref, ffn1_b_ref,                  # (C, 4C) bf16, (1, 4C) f32
    ffn2_w_ref, ffn2_b_ref,                  # (4C, C) bf16, (1, C) f32
    ln2_w_ref, ln2_b_ref,                    # (1, C) f32, (1, C) f32
    out_ref,                                 # (Bb, T, C)  f32
):
    Bb, T, C = x_ref.shape
    R = Bb * T
    bf16 = jnp.bfloat16

    # Lane-dense load; fuse batch and time into one row axis (no lane movement).
    x3 = x_ref[...]                                       # (Bb, T, C)
    xt = x3.reshape(R, C)                                 # (R, C), row = (b, t)

    # ---------------- CoordinateAttention ----------------
    # "sequence" branch: mean over channels, 1 -> mid -> C (1x1 convs).
    xs_mean = jnp.mean(xt, axis=1, keepdims=True)                       # (R, 1)
    h1 = jnp.maximum(xs_mean * w_seq1_ref[...] + b_seq1_ref[...], 0.0)  # (R, mid)
    x_seq = jnp.dot(h1.astype(bf16), w_seq2_ref[...],
                    preferred_element_type=jnp.float32) + b_seq2_ref[...]
    x_seq = jax.nn.sigmoid(x_seq)                                       # (R, C)

    # "feature" branch: per-batch mean over time, C -> mid -> 1.
    # First projection as a small MXU dot (MXU is idle here); the final
    # mid -> 1 projection is a tiny lane reduce on the VPU.
    feat = jnp.mean(x3, axis=1)                                         # (Bb, C)
    g1 = jnp.dot(feat, w_feat1_ref[...],
                 preferred_element_type=jnp.float32) + b_feat1_ref[...] # (Bb, mid)
    g1 = jnp.maximum(g1, 0.0)
    g2 = jnp.sum(g1 * w_feat2_ref[...], axis=-1,
                 keepdims=True) + b_feat2_ref[...]                      # (Bb, 1)
    g2 = jax.nn.sigmoid(g2)

    # attention = sigmoid(sigmoid(seq) + sigmoid(feat)); attn_out = x * attention
    attention = jax.nn.sigmoid(x_seq.reshape(Bb, T, C) + g2[:, :, None])  # (Bb,T,C)
    h = (x3 + x3 * attention).reshape(R, C)               # residual x + x*attn

    # ---------------- residual + LayerNorm 1 (over C, f32) ----------------
    mu = jnp.mean(h, axis=1, keepdims=True)
    var = jnp.mean((h - mu) ** 2, axis=1, keepdims=True)
    y = (h - mu) * jax.lax.rsqrt(var + EPS) * ln1_w_ref[...] + ln1_b_ref[...]

    # ---------------- FFN (C -> 4C -> C), bf16 MXU operands, f32 accumulate ----
    f = jnp.dot(y.astype(bf16), ffn1_w_ref[...],
                preferred_element_type=jnp.float32) + ffn1_b_ref[...]   # (R, 4C)
    f = jnp.maximum(f, 0.0)
    f = jnp.dot(f.astype(bf16), ffn2_w_ref[...],
                preferred_element_type=jnp.float32) + ffn2_b_ref[...]   # (R, C)

    # ---------------- residual + LayerNorm 2 (over C, f32) ----------------
    h2 = y + f
    mu2 = jnp.mean(h2, axis=1, keepdims=True)
    var2 = jnp.mean((h2 - mu2) ** 2, axis=1, keepdims=True)
    out = (h2 - mu2) * jax.lax.rsqrt(var2 + EPS) * ln2_w_ref[...] + ln2_b_ref[...]

    # Lane-dense store straight into the (B, T, C) output slab.
    out_ref[...] = out.reshape(Bb, T, C)


# -----------------------------------------------------------------------------
# Wrapper: (B, C, T) in -> (B, C, T) out, matching the PyTorch module.
# The two XLA transposes keep the kernel I/O lane-dense in C; if the consumer
# can take (B, T, C) directly, drop the final transpose.
# -----------------------------------------------------------------------------
def _pick_block_b(B, T, target_rows=512):
    """Fuse enough batch elements per step that Bb*T rows feed the MXU, while
    keeping >= 2 grid steps so the parallel axis can shard over 2 TCs."""
    bb = max(1, min(B, pl.cdiv(target_rows, T)))
    if B >= 2:
        bb = min(bb, B // 2)          # v7x: never collapse to a 1-step grid
    bb = max(bb, 1)
    while B % bb:
        bb -= 1
    return bb


def _vmem_limit_bytes(bb, T, C, params):
    """Footprint-derived VMEM limit (clamped to v7x's 64 MiB budget)."""
    blk = bb * T * C * 4                                   # one f32 x/out block
    weights = sum(int(p.size) * p.dtype.itemsize for p in params)
    inter = bb * T * 4 * C * 4                             # (R, 4C) f32 FFN mid
    est = weights + 8 * blk + 6 * inter + (8 << 20)        # dbl-buf I/O + temps + margin
    return int(min(max(est, 16 << 20), 64 << 20))


@functools.partial(jax.jit, static_argnames=("block_b",))
def transformer_block(x, kparams, block_b=None):
    B, C, T = x.shape
    bb = _pick_block_b(B, T) if block_b is None else int(block_b)
    assert B % bb == 0, "block_b must divide the batch size"
    params = list(kparams)                    # 16 small 2-D parameter arrays

    x_tc = jnp.transpose(x, (0, 2, 1))        # (B, T, C): channels lane-dense

    in_specs = [pl.BlockSpec((bb, T, C), lambda b: (b, 0, 0))]
    for p in params:
        # Constant index_map: the block is revisited every step, so each
        # weight is DMA'd HBM->VMEM exactly once for the whole grid.
        # (For C >= 512 on v7x add pipeline_mode=pl.Buffered(1) here.)
        in_specs.append(pl.BlockSpec(p.shape, lambda b: (0, 0)))

    out_tc = pl.pallas_call(
        transformer_block_kernel,
        out_shape=jax.ShapeDtypeStruct((B, T, C), jnp.float32),
        grid_spec=pltpu.PrefetchScalarGridSpec(
            num_scalar_prefetch=0,
            grid=(B // bb,),
            in_specs=in_specs,
            out_specs=pl.BlockSpec((bb, T, C), lambda b: (b, 0, 0)),
        ),
        compiler_params=pltpu.CompilerParams(
            dimension_semantics=("parallel",),            # batch axis independent
            vmem_limit_bytes=_vmem_limit_bytes(bb, T, C, params),
        ),
    )(x_tc, *params)
    return jnp.transpose(out_tc, (0, 2, 1))   # back to the module's (B, C, T)


# -----------------------------------------------------------------------------
# Pure-JAX reference (mirrors the PyTorch module, NCT conventions, f32)
# -----------------------------------------------------------------------------
def _layernorm(h, w, b):
    mu = jnp.mean(h, axis=-1, keepdims=True)
    var = jnp.mean((h - mu) ** 2, axis=-1, keepdims=True)
    return (h - mu) / jnp.sqrt(var + EPS) * w + b


def reference_forward(x, prm):
    hi = jax.lax.Precision.HIGHEST
    # CoordinateAttention on x: (B, C, T)
    xs = jnp.mean(x, axis=1, keepdims=True)                                  # (B,1,T)
    h1 = jnp.einsum('oi,bit->bot', prm['w_seq1'], xs, precision=hi) \
        + prm['b_seq1'][None, :, None]
    h1 = jax.nn.relu(h1)
    x_seq = jnp.einsum('oi,bit->bot', prm['w_seq2'], h1, precision=hi) \
        + prm['b_seq2'][None, :, None]
    x_seq = jax.nn.sigmoid(x_seq)                                            # (B,C,T)

    xf = jnp.mean(x, axis=2, keepdims=True)                                  # (B,C,1)
    g1 = jnp.einsum('oi,bit->bot', prm['w_feat1'], xf, precision=hi) \
        + prm['b_feat1'][None, :, None]
    g1 = jax.nn.relu(g1)
    g2 = jnp.einsum('oi,bit->bot', prm['w_feat2'], g1, precision=hi) \
        + prm['b_feat2'][None, :, None]
    g2 = jax.nn.sigmoid(g2)                                                  # (B,1,1)

    attention = jax.nn.sigmoid(x_seq + g2)
    attn_out = x * attention                                                 # (B,C,T)

    xt = jnp.transpose(x, (0, 2, 1))                                         # (B,T,C)
    at = jnp.transpose(attn_out, (0, 2, 1))
    y = _layernorm(xt + at, prm['ln1_w'], prm['ln1_b'])
    f = jax.nn.relu(jnp.einsum('btc,oc->bto', y, prm['ffn1_w'], precision=hi)
                    + prm['ffn1_b'])
    f = jnp.einsum('bth,oh->bto', f, prm['ffn2_w'], precision=hi) + prm['ffn2_b']
    out = _layernorm(y + f, prm['ln2_w'], prm['ln2_b'])
    return jnp.transpose(out, (0, 2, 1))                                     # (B,C,T)


# -----------------------------------------------------------------------------
# Deterministic parameter construction
# -----------------------------------------------------------------------------
def make_params(key, embed_dim, reduction=8):
    C = embed_dim
    mid = C // reduction
    ks = jax.random.split(key, 12)
    s = 0.3
    prm = {
        # CoordinateAttention (Conv1d k=1 weights squeezed to (out, in))
        'w_seq1': s * jax.random.normal(ks[0], (mid, 1), jnp.float32),
        'b_seq1': s * jax.random.normal(ks[1], (mid,), jnp.float32),
        'w_seq2': s * jax.random.normal(ks[2], (C, mid), jnp.float32),
        'b_seq2': s * jax.random.normal(ks[3], (C,), jnp.float32),
        'w_feat1': s * jax.random.normal(ks[4], (mid, C), jnp.float32),
        'b_feat1': s * jax.random.normal(ks[5], (mid,), jnp.float32),
        'w_feat2': s * jax.random.normal(ks[6], (1, mid), jnp.float32),
        'b_feat2': s * jax.random.normal(ks[7], (1,), jnp.float32),
        # LayerNorms
        'ln1_w': jnp.ones((C,), jnp.float32) + 0.1 * jax.random.normal(ks[8], (C,)),
        'ln1_b': 0.1 * jax.random.normal(ks[9], (C,), jnp.float32),
        'ln2_w': jnp.ones((C,), jnp.float32) + 0.1 * jax.random.normal(ks[10], (C,)),
        'ln2_b': 0.1 * jax.random.normal(ks[11], (C,), jnp.float32),
        # FFN (Linear weights stored PyTorch-style: (out_features, in_features))
        'ffn1_w': s * jax.random.normal(jax.random.fold_in(key, 100), (4 * C, C)),
        'ffn1_b': s * jax.random.normal(jax.random.fold_in(key, 101), (4 * C,)),
        'ffn2_w': s * jax.random.normal(jax.random.fold_in(key, 102), (C, 4 * C)),
        'ffn2_b': s * jax.random.normal(jax.random.fold_in(key, 103), (C,)),
    }
    return prm


def to_kernel_params(prm):
    # Reshape/transpose to the 2-D layouts the kernel expects.  The big MXU
    # operands (seq2 projection, FFN1, FFN2) are cast to bf16 once here so the
    # bf16 copies are what gets DMA'd into VMEM; everything else stays f32.
    bf16 = jnp.bfloat16
    return (
        prm['w_seq1'].T.astype(jnp.float32),   # (1, mid)
        prm['b_seq1'][None, :],                # (1, mid)
        prm['w_seq2'].T.astype(bf16),          # (mid, C)   bf16 MXU operand
        prm['b_seq2'][None, :],                # (1, C)
        prm['w_feat1'].T,                      # (C, mid)   MXU dot, f32
        prm['b_feat1'][None, :],               # (1, mid)
        prm['w_feat2'],                        # (1, mid)   VPU lane reduce
        prm['b_feat2'][None, :],               # (1, 1)
        prm['ln1_w'][None, :],                 # (1, C)
        prm['ln1_b'][None, :],                 # (1, C)
        prm['ffn1_w'].T.astype(bf16),          # (C, 4C)    bf16 MXU operand
        prm['ffn1_b'][None, :],                # (1, 4C)
        prm['ffn2_w'].T.astype(bf16),          # (4C, C)    bf16 MXU operand
        prm['ffn2_b'][None, :],                # (1, C)
        prm['ln2_w'][None, :],                 # (1, C)
        prm['ln2_b'][None, :],                 # (1, C)
    )


if __name__ == "__main__":
    key = jax.random.PRNGKey(0)
    k1x, k1p, k2x, k2p = jax.random.split(key, 4)

    # ---- Test 1: original toy config (B, C, T) = (2, 32, 8); bb=1 so the
    #      parallel grid has 2 steps (one per TensorCore on v7x).
    B1, C1, T1 = 2, 32, 8
    x1 = jax.random.normal(k1x, (B1, C1, T1), jnp.float32)
    prm1 = make_params(k1p, C1)
    out1 = jax.block_until_ready(transformer_block(x1, to_kernel_params(prm1)))
    ref1 = jax.block_until_ready(reference_forward(x1, prm1))
    np.testing.assert_allclose(np.asarray(out1), np.asarray(ref1),
                               rtol=2e-2, atol=2e-2)
    assert out1.shape == (B1, C1, T1)

    # ---- Test 2: lane-dense channels (C=128); auto block_b gives bb=4 over a
    #      2-step "parallel" grid (exercises the multi-block index maps).
    B2, C2, T2 = 8, 128, 16
    x2 = jax.random.normal(k2x, (B2, C2, T2), jnp.float32)
    prm2 = make_params(k2p, C2)
    out2 = jax.block_until_ready(transformer_block(x2, to_kernel_params(prm2)))
    ref2 = jax.block_until_ready(reference_forward(x2, prm2))
    np.testing.assert_allclose(np.asarray(out2), np.asarray(ref2),
                               rtol=3e-2, atol=3e-2)
    assert out2.shape == (B2, C2, T2)

    print("KERNEL_OK")
</pallas_src>

<mosaic_0001>
module attributes {stable_mosaic.version = 11 : i64} {
  func.func @transformer_block_kernel(%arg0: i32, %arg1: memref<1x8x32xf32, #tpu.memory_space<vmem>>, %arg2: memref<1x4xf32, #tpu.memory_space<vmem>>, %arg3: memref<1x4xf32, #tpu.memory_space<vmem>>, %arg4: memref<4x32xbf16, #tpu.memory_space<vmem>>, %arg5: memref<1x32xf32, #tpu.memory_space<vmem>>, %arg6: memref<32x4xf32, #tpu.memory_space<vmem>>, %arg7: memref<1x4xf32, #tpu.memory_space<vmem>>, %arg8: memref<1x4xf32, #tpu.memory_space<vmem>>, %arg9: memref<1x1xf32, #tpu.memory_space<vmem>>, %arg10: memref<1x32xf32, #tpu.memory_space<vmem>>, %arg11: memref<1x32xf32, #tpu.memory_space<vmem>>, %arg12: memref<32x128xbf16, #tpu.memory_space<vmem>>, %arg13: memref<1x128xf32, #tpu.memory_space<vmem>>, %arg14: memref<128x32xbf16, #tpu.memory_space<vmem>>, %arg15: memref<1x32xf32, #tpu.memory_space<vmem>>, %arg16: memref<1x32xf32, #tpu.memory_space<vmem>>, %arg17: memref<1x32xf32, #tpu.memory_space<vmem>>, %arg18: memref<1x8x32xf32, #tpu.memory_space<vmem>>) attributes {dimension_semantics = [#tpu.dimension_semantics<parallel>], iteration_bounds = array<i64: 2>, scalar_prefetch = 0 : i64, scratch_operands = 0 : i64, tpu.core_type = #tpu.core_type<tc>, window_params = [{transform_indices = @transform_0, window_bounds = array<i64: 1, 8, 32>}, {pipeline_mode = #tpu.pipeline_mode<synchronous>, transform_indices = @transform_1, window_bounds = array<i64: 1, 4>}, {pipeline_mode = #tpu.pipeline_mode<synchronous>, transform_indices = @transform_2, window_bounds = array<i64: 1, 4>}, {pipeline_mode = #tpu.pipeline_mode<synchronous>, transform_indices = @transform_3, window_bounds = array<i64: 4, 32>}, {pipeline_mode = #tpu.pipeline_mode<synchronous>, transform_indices = @transform_4, window_bounds = array<i64: 1, 32>}, {pipeline_mode = #tpu.pipeline_mode<synchronous>, transform_indices = @transform_5, window_bounds = array<i64: 32, 4>}, {pipeline_mode = #tpu.pipeline_mode<synchronous>, transform_indices = @transform_6, window_bounds = array<i64: 1, 4>}, {pipeline_mode = #tpu.pipeline_mode<synchronous>, transform_indices = @transform_7, window_bounds = array<i64: 1, 4>}, {pipeline_mode = #tpu.pipeline_mode<synchronous>, transform_indices = @transform_8, window_bounds = array<i64: 1, 1>}, {pipeline_mode = #tpu.pipeline_mode<synchronous>, transform_indices = @transform_9, window_bounds = array<i64: 1, 32>}, {pipeline_mode = #tpu.pipeline_mode<synchronous>, transform_indices = @transform_10, window_bounds = array<i64: 1, 32>}, {pipeline_mode = #tpu.pipeline_mode<synchronous>, transform_indices = @transform_11, window_bounds = array<i64: 32, 128>}, {pipeline_mode = #tpu.pipeline_mode<synchronous>, transform_indices = @transform_12, window_bounds = array<i64: 1, 128>}, {pipeline_mode = #tpu.pipeline_mode<synchronous>, transform_indices = @transform_13, window_bounds = array<i64: 128, 32>}, {pipeline_mode = #tpu.pipeline_mode<synchronous>, transform_indices = @transform_14, window_bounds = array<i64: 1, 32>}, {pipeline_mode = #tpu.pipeline_mode<synchronous>, transform_indices = @transform_15, window_bounds = array<i64: 1, 32>}, {pipeline_mode = #tpu.pipeline_mode<synchronous>, transform_indices = @transform_16, window_bounds = array<i64: 1, 32>}, {transform_indices = @transform_17, window_bounds = array<i64: 1, 8, 32>}]} {
    %c0 = arith.constant 0 : index
    %c0_0 = arith.constant 0 : index
    %c0_1 = arith.constant 0 : index
    %0 = vector.load %arg1[%c0, %c0_0, %c0_1] : memref<1x8x32xf32, #tpu.memory_space<vmem>>, vector<1x8x32xf32>
    %1 = vector.shape_cast %0 : vector<1x8x32xf32> to vector<8x32xf32>
    %cst = arith.constant dense<0.000000e+00> : vector<8xf32>
    %2 = vector.multi_reduction <add>, %1, %cst [1] : vector<8x32xf32> to vector<8xf32>
    %3 = vector.shape_cast %2 : vector<8xf32> to vector<8x1xf32>
    %cst_2 = arith.constant 3.200000e+01 : f32
    %4 = vector.broadcast %cst_2 : f32 to vector<8x1xf32>
    %5 = arith.divf %3, %4 : vector<8x1xf32>
    %c0_3 = arith.constant 0 : index
    %c0_4 = arith.constant 0 : index
    %6 = vector.load %arg2[%c0_3, %c0_4] : memref<1x4xf32, #tpu.memory_space<vmem>>, vector<1x4xf32>
    %7 = vector.broadcast %5 : vector<8x1xf32> to vector<8x4xf32>
    %8 = vector.broadcast %6 : vector<1x4xf32> to vector<8x4xf32>
    %9 = arith.mulf %7, %8 : vector<8x4xf32>
    %c0_5 = arith.constant 0 : index
    %c0_6 = arith.constant 0 : index
    %10 = vector.load %arg3[%c0_5, %c0_6] : memref<1x4xf32, #tpu.memory_space<vmem>>, vector<1x4xf32>
    %11 = vector.broadcast %10 : vector<1x4xf32> to vector<8x4xf32>
    %12 = arith.addf %9, %11 : vector<8x4xf32>
    %cst_7 = arith.constant 0.000000e+00 : f32
    %13 = vector.broadcast %cst_7 : f32 to vector<8x4xf32>
    %14 = arith.maximumf %12, %13 : vector<8x4xf32>
    %15 = arith.truncf %14 : vector<8x4xf32> to vector<8x4xbf16>
    %c0_8 = arith.constant 0 : index
    %c0_9 = arith.constant 0 : index
    %16 = vector.load %arg4[%c0_8, %c0_9] : memref<4x32xbf16, #tpu.memory_space<vmem>>, vector<4x32xbf16>
    %cst_10 = arith.constant dense<0.000000e+00> : vector<8x32xf32>
    %17 = tpu.matmul %15, %16, %cst_10 {dimension_numbers = #tpu.dot_dimension_numbers<[1], [0], [0], [1], [0, 0, 1, 1], [], []>} : vector<8x4xbf16>, vector<4x32xbf16>, vector<8x32xf32> -> vector<8x32xf32>
    %c0_11 = arith.constant 0 : index
    %c0_12 = arith.constant 0 : index
    %18 = vector.load %arg5[%c0_11, %c0_12] : memref<1x32xf32, #tpu.memory_space<vmem>>, vector<1x32xf32>
    %19 = vector.broadcast %18 : vector<1x32xf32> to vector<8x32xf32>
    %20 = arith.addf %17, %19 : vector<8x32xf32>
    %21 = arith.negf %20 : vector<8x32xf32>
    %22 = math.exp %21 : vector<8x32xf32>
    %cst_13 = arith.constant 1.000000e+00 : f32
    %23 = vector.broadcast %cst_13 : f32 to vector<8x32xf32>
    %24 = arith.addf %23, %22 : vector<8x32xf32>
    %25 = arith.divf %23, %24 : vector<8x32xf32>
    %cst_14 = arith.constant dense<0.000000e+00> : vector<1x32xf32>
    %26 = vector.multi_reduction <add>, %0, %cst_14 [1] : vector<1x8x32xf32> to vector<1x32xf32>
    %cst_15 = arith.constant 8.000000e+00 : f32
    %27 = vector.broadcast %cst_15 : f32 to vector<1x32xf32>
    %28 = arith.divf %26, %27 : vector<1x32xf32>
    %c0_16 = arith.constant 0 : index
    %c0_17 = arith.constant 0 : index
    %29 = vector.load %arg6[%c0_16, %c0_17] : memref<32x4xf32, #tpu.memory_space<vmem>>, vector<32x4xf32>
    %cst_18 = arith.constant dense<0.000000e+00> : vector<1x4xf32>
    %30 = tpu.matmul %28, %29, %cst_18 {dimension_numbers = #tpu.dot_dimension_numbers<[1], [0], [0], [1], [0, 0, 1, 1], [], []>} : vector<1x32xf32>, vector<32x4xf32>, vector<1x4xf32> -> vector<1x4xf32>
    %c0_19 = arith.constant 0 : index
    %c0_20 = arith.constant 0 : index
    %31 = vector.load %arg7[%c0_19, %c0_20] : memref<1x4xf32, #tpu.memory_space<vmem>>, vector<1x4xf32>
    %32 = arith.addf %30, %31 : vector<1x4xf32>
    %cst_21 = arith.constant 0.000000e+00 : f32
    %33 = vector.broadcast %cst_21 : f32 to vector<1x4xf32>
    %34 = arith.maximumf %32, %33 : vector<1x4xf32>
    %c0_22 = arith.constant 0 : index
    %c0_23 = arith.constant 0 : index
    %35 = vector.load %arg8[%c0_22, %c0_23] : memref<1x4xf32, #tpu.memory_space<vmem>>, vector<1x4xf32>
    %36 = arith.mulf %34, %35 : vector<1x4xf32>
    %cst_24 = arith.constant dense<0.000000e+00> : vector<1xf32>
    %37 = vector.multi_reduction <add>, %36, %cst_24 [1] : vector<1x4xf32> to vector<1xf32>
    %38 = vector.shape_cast %37 : vector<1xf32> to vector<1x1xf32>
    %c0_25 = arith.constant 0 : index
    %c0_26 = arith.constant 0 : index
    %39 = vector.load %arg9[%c0_25, %c0_26] : memref<1x1xf32, #tpu.memory_space<vmem>>, vector<1x1xf32>
    %40 = arith.addf %38, %39 : vector<1x1xf32>
    %41 = arith.negf %40 : vector<1x1xf32>
    %42 = math.exp %41 : vector<1x1xf32>
    %cst_27 = arith.constant 1.000000e+00 : f32
    %43 = vector.broadcast %cst_27 : f32 to vector<1x1xf32>
    %44 = arith.addf %43, %42 : vector<1x1xf32>
    %45 = arith.divf %43, %44 : vector<1x1xf32>
    %46 = vector.shape_cast %25 : vector<8x32xf32> to vector<1x8x32xf32>
    %47 = vector.shape_cast %45 : vector<1x1xf32> to vector<1x1x1xf32>
    %48 = vector.broadcast %47 : vector<1x1x1xf32> to vector<1x8x32xf32>
    %49 = arith.addf %46, %48 : vector<1x8x32xf32>
    %50 = arith.negf %49 : vector<1x8x32xf32>
    %51 = math.exp %50 : vector<1x8x32xf32>
    %cst_28 = arith.constant 1.000000e+00 : f32
    %52 = vector.broadcast %cst_28 : f32 to vector<1x8x32xf32>
    %53 = arith.addf %52, %51 : vector<1x8x32xf32>
    %54 = arith.divf %52, %53 : vector<1x8x32xf32>
    %55 = arith.mulf %0, %54 : vector<1x8x32xf32>
    %56 = arith.addf %0, %55 : vector<1x8x32xf32>
    %57 = vector.shape_cast %56 : vector<1x8x32xf32> to vector<8x32xf32>
    %cst_29 = arith.constant dense<0.000000e+00> : vector<8xf32>
    %58 = vector.multi_reduction <add>, %57, %cst_29 [1] : vector<8x32xf32> to vector<8xf32>
    %59 = vector.shape_cast %58 : vector<8xf32> to vector<8x1xf32>
    %cst_30 = arith.constant 3.200000e+01 : f32
    %60 = vector.broadcast %cst_30 : f32 to vector<8x1xf32>
    %61 = arith.divf %59, %60 : vector<8x1xf32>
    %62 = vector.broadcast %61 : vector<8x1xf32> to vector<8x32xf32>
    %63 = arith.subf %57, %62 : vector<8x32xf32>
    %64 = arith.mulf %63, %63 : vector<8x32xf32>
    %cst_31 = arith.constant dense<0.000000e+00> : vector<8xf32>
    %65 = vector.multi_reduction <add>, %64, %cst_31 [1] : vector<8x32xf32> to vector<8xf32>
    %66 = vector.shape_cast %65 : vector<8xf32> to vector<8x1xf32>
    %cst_32 = arith.constant 3.200000e+01 : f32
    %67 = vector.broadcast %cst_32 : f32 to vector<8x1xf32>
    %68 = arith.divf %66, %67 : vector<8x1xf32>
    %69 = vector.broadcast %61 : vector<8x1xf32> to vector<8x32xf32>
    %70 = arith.subf %57, %69 : vector<8x32xf32>
    %cst_33 = arith.constant 9.99999974E-6 : f32
    %71 = vector.broadcast %cst_33 : f32 to vector<8x1xf32>
    %72 = arith.addf %68, %71 : vector<8x1xf32>
    %73 = math.rsqrt %72 : vector<8x1xf32>
    %74 = vector.broadcast %73 : vector<8x1xf32> to vector<8x32xf32>
    %75 = arith.mulf %70, %74 : vector<8x32xf32>
    %c0_34 = arith.constant 0 : index
    %c0_35 = arith.constant 0 : index
    %76 = vector.load %arg10[%c0_34, %c0_35] : memref<1x32xf32, #tpu.memory_space<vmem>>, vector<1x32xf32>
    %77 = vector.broadcast %76 : vector<1x32xf32> to vector<8x32xf32>
    %78 = arith.mulf %75, %77 : vector<8x32xf32>
    %c0_36 = arith.constant 0 : index
    %c0_37 = arith.constant 0 : index
    %79 = vector.load %arg11[%c0_36, %c0_37] : memref<1x32xf32, #tpu.memory_space<vmem>>, vector<1x32xf32>
    %80 = vector.broadcast %79 : vector<1x32xf32> to vector<8x32xf32>
    %81 = arith.addf %78, %80 : vector<8x32xf32>
    %82 = arith.truncf %81 : vector<8x32xf32> to vector<8x32xbf16>
    %c0_38 = arith.constant 0 : index
    %c0_39 = arith.constant 0 : index
    %83 = vector.load %arg12[%c0_38, %c0_39] : memref<32x128xbf16, #tpu.memory_space<vmem>>, vector<32x128xbf16>
    %cst_40 = arith.constant dense<0.000000e+00> : vector<8x128xf32>
    %84 = tpu.matmul %82, %83, %cst_40 {dimension_numbers = #tpu.dot_dimension_numbers<[1], [0], [0], [1], [0, 0, 1, 1], [], []>} : vector<8x32xbf16>, vector<32x128xbf16>, vector<8x128xf32> -> vector<8x128xf32>
    %c0_41 = arith.constant 0 : index
    %c0_42 = arith.constant 0 : index
    %85 = vector.load %arg13[%c0_41, %c0_42] : memref<1x128xf32, #tpu.memory_space<vmem>>, vector<1x128xf32>
    %86 = vector.broadcast %85 : vector<1x128xf32> to vector<8x128xf32>
    %87 = arith.addf %84, %86 : vector<8x128xf32>
    %cst_43 = arith.constant 0.000000e+00 : f32
    %88 = vector.broadcast %cst_43 : f32 to vector<8x128xf32>
    %89 = arith.maximumf %87, %88 : vector<8x128xf32>
    %90 = arith.truncf %89 : vector<8x128xf32> to vector<8x128xbf16>
    %c0_44 = arith.constant 0 : index
    %c0_45 = arith.constant 0 : index
    %91 = vector.load %arg14[%c0_44, %c0_45] : memref<128x32xbf16, #tpu.memory_space<vmem>>, vector<128x32xbf16>
    %cst_46 = arith.constant dense<0.000000e+00> : vector<8x32xf32>
    %92 = tpu.matmul %90, %91, %cst_46 {dimension_numbers = #tpu.dot_dimension_numbers<[1], [0], [0], [1], [0, 0, 1, 1], [], []>} : vector<8x128xbf16>, vector<128x32xbf16>, vector<8x32xf32> -> vector<8x32xf32>
    %c0_47 = arith.constant 0 : index
    %c0_48 = arith.constant 0 : index
    %93 = vector.load %arg15[%c0_47, %c0_48] : memref<1x32xf32, #tpu.memory_space<vmem>>, vector<1x32xf32>
    %94 = vector.broadcast %93 : vector<1x32xf32> to vector<8x32xf32>
    %95 = arith.addf %92, %94 : vector<8x32xf32>
    %96 = arith.addf %81, %95 : vector<8x32xf32>
    %cst_49 = arith.constant dense<0.000000e+00> : vector<8xf32>
    %97 = vector.multi_reduction <add>, %96, %cst_49 [1] : vector<8x32xf32> to vector<8xf32>
    %98 = vector.shape_cast %97 : vector<8xf32> to vector<8x1xf32>
    %cst_50 = arith.constant 3.200000e+01 : f32
    %99 = vector.broadcast %cst_50 : f32 to vector<8x1xf32>
    %100 = arith.divf %98, %99 : vector<8x1xf32>
    %101 = vector.broadcast %100 : vector<8x1xf32> to vector<8x32xf32>
    %102 = arith.subf %96, %101 : vector<8x32xf32>
    %103 = arith.mulf %102, %102 : vector<8x32xf32>
    %cst_51 = arith.constant dense<0.000000e+00> : vector<8xf32>
    %104 = vector.multi_reduction <add>, %103, %cst_51 [1] : vector<8x32xf32> to vector<8xf32>
    %105 = vector.shape_cast %104 : vector<8xf32> to vector<8x1xf32>
    %cst_52 = arith.constant 3.200000e+01 : f32
    %106 = vector.broadcast %cst_52 : f32 to vector<8x1xf32>
    %107 = arith.divf %105, %106 : vector<8x1xf32>
    %108 = vector.broadcast %100 : vector<8x1xf32> to vector<8x32xf32>
    %109 = arith.subf %96, %108 : vector<8x32xf32>
    %cst_53 = arith.constant 9.99999974E-6 : f32
    %110 = vector.broadcast %cst_53 : f32 to vector<8x1xf32>
    %111 = arith.addf %107, %110 : vector<8x1xf32>
    %112 = math.rsqrt %111 : vector<8x1xf32>
    %113 = vector.broadcast %112 : vector<8x1xf32> to vector<8x32xf32>
    %114 = arith.mulf %109, %113 : vector<8x32xf32>
    %c0_54 = arith.constant 0 : index
    %c0_55 = arith.constant 0 : index
    %115 = vector.load %arg16[%c0_54, %c0_55] : memref<1x32xf32, #tpu.memory_space<vmem>>, vector<1x32xf32>
    %116 = vector.broadcast %115 : vector<1x32xf32> to vector<8x32xf32>
    %117 = arith.mulf %114, %116 : vector<8x32xf32>
    %c0_56 = arith.constant 0 : index
    %c0_57 = arith.constant 0 : index
    %118 = vector.load %arg17[%c0_56, %c0_57] : memref<1x32xf32, #tpu.memory_space<vmem>>, vector<1x32xf32>
    %119 = vector.broadcast %118 : vector<1x32xf32> to vector<8x32xf32>
    %120 = arith.addf %117, %119 : vector<8x32xf32>
    %121 = vector.shape_cast %120 : vector<8x32xf32> to vector<1x8x32xf32>
    %c0_58 = arith.constant 0 : index
    %c0_59 = arith.constant 0 : index
    %c0_60 = arith.constant 0 : index
    %122 = vector.load %arg18[%c0_58, %c0_59, %c0_60] : memref<1x8x32xf32, #tpu.memory_space<vmem>>, vector<1x8x32xf32>
    tpu.vector_store %arg18[%c0_58, %c0_59, %c0_60], %121 {strides = array<i32>} : memref<1x8x32xf32, #tpu.memory_space<vmem>>, vector<1x8x32xf32>,
    return
  }
  func.func @transform_0(%arg0: i32) -> (i32, i32, i32) {
    %c0_i32 = arith.constant 0 : i32
    %c0_i32_0 = arith.constant 0 : i32
    %c0_i32_1 = arith.constant 0 : i32
    return %arg0, %c0_i32, %c0_i32_0 : i32, i32, i32
  }
  func.func @transform_1(%arg0: i32) -> (i32, i32) {
    %c0_i32 = arith.constant 0 : i32
    %c0_i32_0 = arith.constant 0 : i32
    %c0_i32_1 = arith.constant 0 : i32
    return %c0_i32, %c0_i32_0 : i32, i32
  }
  func.func @transform_2(%arg0: i32) -> (i32, i32) {
    %c0_i32 = arith.constant 0 : i32
    %c0_i32_0 = arith.constant 0 : i32
    %c0_i32_1 = arith.constant 0 : i32
    return %c0_i32, %c0_i32_0 : i32, i32
  }
  func.func @transform_3(%arg0: i32) -> (i32, i32) {
    %c0_i32 = arith.constant 0 : i32
    %c0_i32_0 = arith.constant 0 : i32
    %c0_i32_1 = arith.constant 0 : i32
    return %c0_i32, %c0_i32_0 : i32, i32
  }
  func.func @transform_4(%arg0: i32) -> (i32, i32) {
    %c0_i32 = arith.constant 0 : i32
    %c0_i32_0 = arith.constant 0 : i32
    %c0_i32_1 = arith.constant 0 : i32
    return %c0_i32, %c0_i32_0 : i32, i32
  }
  func.func @transform_5(%arg0: i32) -> (i32, i32) {
    %c0_i32 = arith.constant 0 : i32
    %c0_i32_0 = arith.constant 0 : i32
    %c0_i32_1 = arith.constant 0 : i32
    return %c0_i32, %c0_i32_0 : i32, i32
  }
  func.func @transform_6(%arg0: i32) -> (i32, i32) {
    %c0_i32 = arith.constant 0 : i32
    %c0_i32_0 = arith.constant 0 : i32
    %c0_i32_1 = arith.constant 0 : i32
    return %c0_i32, %c0_i32_0 : i32, i32
  }
  func.func @transform_7(%arg0: i32) -> (i32, i32) {
    %c0_i32 = arith.constant 0 : i32
    %c0_i32_0 = arith.constant 0 : i32
    %c0_i32_1 = arith.constant 0 : i32
    return %c0_i32, %c0_i32_0 : i32, i32
  }
  func.func @transform_8(%arg0: i32) -> (i32, i32) {
    %c0_i32 = arith.constant 0 : i32
    %c0_i32_0 = arith.constant 0 : i32
    %c0_i32_1 = arith.constant 0 : i32
    return %c0_i32, %c0_i32_0 : i32, i32
  }
  func.func @transform_9(%arg0: i32) -> (i32, i32) {
    %c0_i32 = arith.constant 0 : i32
    %c0_i32_0 = arith.constant 0 : i32
    %c0_i32_1 = arith.constant 0 : i32
    return %c0_i32, %c0_i32_0 : i32, i32
  }
  func.func @transform_10(%arg0: i32) -> (i32, i32) {
    %c0_i32 = arith.constant 0 : i32
    %c0_i32_0 = arith.constant 0 : i32
    %c0_i32_1 = arith.constant 0 : i32
    return %c0_i32, %c0_i32_0 : i32, i32
  }
  func.func @transform_11(%arg0: i32) -> (i32, i32) {
    %c0_i32 = arith.constant 0 : i32
    %c0_i32_0 = arith.constant 0 : i32
    %c0_i32_1 = arith.constant 0 : i32
    return %c0_i32, %c0_i32_0 : i32, i32
  }
  func.func @transform_12(%arg0: i32) -> (i32, i32) {
    %c0_i32 = arith.constant 0 : i32
    %c0_i32_0 = arith.constant 0 : i32
    %c0_i32_1 = arith.constant 0 : i32
    return %c0_i32, %c0_i32_0 : i32, i32
  }
  func.func @transform_13(%arg0: i32) -> (i32, i32) {
    %c0_i32 = arith.constant 0 : i32
    %c0_i32_0 = arith.constant 0 : i32
    %c0_i32_1 = arith.constant 0 : i32
    return %c0_i32, %c0_i32_0 : i32, i32
  }
  func.func @transform_14(%arg0: i32) -> (i32, i32) {
    %c0_i32 = arith.constant 0 : i32
    %c0_i32_0 = arith.constant 0 : i32
    %c0_i32_1 = arith.constant 0 : i32
    return %c0_i32, %c0_i32_0 : i32, i32
  }
  func.func @transform_15(%arg0: i32) -> (i32, i32) {
    %c0_i32 = arith.constant 0 : i32
    %c0_i32_0 = arith.constant 0 : i32
    %c0_i32_1 = arith.constant 0 : i32
    return %c0_i32, %c0_i32_0 : i32, i32
  }
  func.func @transform_16(%arg0: i32) -> (i32, i32) {
    %c0_i32 = arith.constant 0 : i32
    %c0_i32_0 = arith.constant 0 : i32
    %c0_i32_1 = arith.constant 0 : i32
    return %c0_i32, %c0_i32_0 : i32, i32
  }
  func.func @transform_17(%arg0: i32) -> (i32, i32, i32) {
    %c0_i32 = arith.constant 0 : i32
    %c0_i32_0 = arith.constant 0 : i32
    %c0_i32_1 = arith.constant 0 : i32
    return %arg0, %c0_i32, %c0_i32_0 : i32, i32, i32
  }
}

</mosaic_0001>

<bundles_post_ra>
// kernel: transformer_block.1
= control target key start
LH: loop header
LB: loop body
LE: loop exit
PB: predicated region body
PF: predicated region fallthrough
CT: control target
= control target key end

     0   :  { %s1607_s0 = inlined_call_operand.vmem [shape: f32[2,8,32], index: 0, kind: input, shape index: {}]   ;;  %s1608_s1 = inlined_call_operand.vmem [shape: f32[1,4], index: 1, kind: input, shape index: {}]   ;;  %s1609_s2 = inlined_call_operand.vmem [shape: f32[1,4], index: 2, kind: input, shape index: {}]   ;;  %s1610_s3 = inlined_call_operand.vmem [shape: bf16[4,32], index: 3, kind: input, shape index: {}]   ;;  %s1611_s4 = inlined_call_operand.vmem [shape: f32[1,32], index: 4, kind: input, shape index: {}]   ;;  %s1612_s5 = inlined_call_operand.vmem [shape: f32[32,4], index: 5, kind: input, shape index: {}]   ;;  %s1613_s6 = inlined_call_operand.vmem [shape: f32[1,4], index: 6, kind: input, shape index: {}]   ;;  %s1614_s7 = inlined_call_operand.vmem [shape: f32[1,4], index: 7, kind: input, shape index: {}]   ;;  %s1615_s8 = inlined_call_operand.<no memory space> [shape: f32[1,1], index: 8, kind: input, shape index: {}]   ;;  %s1616_s9 = inlined_call_operand.vmem [shape: f32[1,32], index: 9, kind: input, shape index: {}]   ;;  %s1617_s10 = inlined_call_operand.vmem [shape: f32[1,32], index: 10, kind: input, shape index: {}]   ;;  %s1618_s11 = inlined_call_operand.vmem [shape: bf16[32,128], index: 11, kind: input, shape index: {}]   ;;  %s1619_s12 = inlined_call_operand.vmem [shape: f32[1,128], index: 12, kind: input, shape index: {}]   ;;  %s1620_s13 = inlined_call_operand.vmem [shape: bf16[128,32], index: 13, kind: input, shape index: {}]   ;;  %s1621_s14 = inlined_call_operand.vmem [shape: f32[1,32], index: 14, kind: input, shape index: {}]   ;;  %s1622_s15 = inlined_call_operand.vmem [shape: f32[1,32], index: 15, kind: input, shape index: {}]   ;;  %s1623_s16 = inlined_call_operand.vmem [shape: f32[1,32], index: 16, kind: input, shape index: {}]   ;;  %s1624_s17 = inlined_call_operand.hbm [shape: f32[2,8,32], index: 17, kind: output, shape index: {}]  }
   0x1   :  { %1625 = sst [smem:[#allocation7_spill]] %s1607_s0  ;;  %v22_v0 = vstv %s1615_s8 }
   0x2   :  { %1626 = sst [smem:[#allocation8_spill]] %s1608_s1  ;;  %23 = vst [vmem:[#allocation2] sm:$0x1] %v22_v0 }
   0x3   :  { %1627 = sst [smem:[#allocation9_spill]] %s1609_s2 }
   0x4   :  { %1628 = sst [smem:[#allocation10_spill]] %s1610_s3 }
   0x5   :  { %1629 = sst [smem:[#allocation11_spill]] %s1611_s4 }
   0x6   :  { %1630 = sst [smem:[#allocation12_spill]] %s1612_s5 }
   0x7   :  { %24 = vsyncpa [#allocation4], 0 }
   0x8   :  { %26 = vsyncpa [#allocation4 + $0x1], 0  ;;  %s1397_s26 = smov 0   ;;  %s1399_s27 = smov 0  }
   0x9   :  { %s1401_s28 = smov 0   ;;  %s1403_s29 = smov 0  }
   0xa LB: > { %s1418_s8 = sadd.s32 4294967295, %s1298_s29   ;;  %s1061_s0 = sadd.s32 4294967294, %s1298_s29   ;;  %s1298_s29 = sphi %s1403_s29, %s1644_s29   ;;  %s1294_s28 = sphi %s1401_s28, %s1643_s28   ;;  %s1290_s27 = sphi %s1399_s27, %s1642_s27   ;;  %s1286_s26 = sphi %s1397_s26, %s1641_s26  }
   0xb   : > { %s1422_s30 = sadd.s32 1, %s1298_s29   ;;  %s401_s18 = sadd.s32 1, %s1294_s28 }
   0xc   : > { %s398_s19 = ssub.s32 %s1298_s29, %s1422_s30  ;;  %p411_p0 = scmp.ne.s32.totalorder %s1294_s28, %s1290_s27 }
   0xd   : > { %p399_p1 = scmp.eq.s32.totalorder %s398_s19, 0  ;;  %p412_p2 = scmp.eq.s32.totalorder %s1418_s8, 1 }
   0xe   : > { %p417_p3 = scmp.ne.s32.totalorder %s1290_s27, %s1286_s26  ;;  %p418_p4 = scmp.eq.s32.totalorder %s1061_s0, 1 }
   0xf   : > { %s1433_s1 = scalar_select %p399_p1, %s1294_s28, %s401_s18  }
  0x10   : > { %p1435_p5 = por %p412_p2, %p411_p0  ;;  %p1439_p6 = por %p418_p4, %p417_p3 }
  0x11   : > { %1631 = sst [smem:[#allocation6_spill]] %s1433_s1  ;;  %p1064_p7 = scmp.ge.s32.totalorder %s1298_s29, 1 }
  0x12   : > { %p491_p8 = scmp.lt.s32.totalorder %s1298_s29, 3 }
  0x14   : > { %p492_p9 = pnand %p1064_p7, %p491_p8 }
  0x15   : > { %p542_p10 = scmp.lt.s32.totalorder (!%p492_p9), %s1418_s8, 1  ;;  %vm548_vm0 = vcmask (!%p492_p9), 261120   ;;  %s1634_s0 = sld [smem:[#allocation7_spill]] (!%p492_p9)  ;;  %vm584_vm1 = vcmask (!%p492_p9), 1041408   ;;  %v1300_v4 = vmov (!%p492_p9), 0.0   ;;  %vm1301_vm2 = vmmov (!%p492_p9), 0  }
  0x16   : > { %495 = sbr.rel (%p492_p9) target bundleno = 1743 (0x6cf), region = 88  ;;  %s1635_s3 = sld [smem:[#allocation10_spill]] (!%p492_p9)  ;;  %1115 = vmatprep.subr.bf16.mxu0 (!%p492_p9), %v1300_v4  ;;  %1140 = vmatprep.subr.bf16.mxu1 (!%p492_p9), %v1300_v4  ;;  %v1302_v6 = vmov (!%p492_p9), 0.0|0.0   ;;  %vm580_vm3 = vcmask (!%p492_p9), 31744   ;;  %v646_v32 = vld [vmem:[%s1613_s6] sm:$0x1] (!%p492_p9) }
  0x17   : > { %1117 = vmatprep.mubr.msk.bf16.mxu0 (!%p492_p9), %vm1301_vm2, %v1300_v4  ;;  %1156 = vmatprep.mubr.msk.bf16.mxu1 (!%p492_p9), %vm1301_vm2, %v1300_v4  ;;  %s1637_s2 = sld [smem:[#allocation9_spill]] (!%p492_p9)  ;;  %s1638_s5 = sld [smem:[#allocation12_spill]] (!%p492_p9)  ;;  %v721_v36 = vld [vmem:[%s1614_s7] sm:$0x1] (!%p492_p9)  ;;  %vm723_vm4 = vcmask (!%p492_p9), 24576  }
  0x18   : > { %v727_v40 = vld [vmem:[#allocation2] sm:$0x1] (!%p492_p9)  ;;  %s1639_s4 = sld [smem:[#allocation11_spill]] (!%p492_p9)  ;;  %s539_s24 = sand.u32 (!%p492_p9), 1, %s1290_s27  }
  0x19   : > { %s1093_s1 = sshll.u32 (!%p492_p9), %s1418_s8, 7  ;;  %s989_s25 = scalar_lea.sflag (!%p492_p9), [#allocation4], %s539_s24 }
  0x1c   : > { %v572_v3 = vld [vmem:[%s1635_s3] sm:$0x3] (!%p492_p9)  ;;  %s1065_s3 = sshll.u32 (!%p492_p9), %s539_s24, 3 }
  0x1d   : > { %s543_s22 = scalar_select %p542_p10, %s1418_s8, 1  ;;  %v586_v5 = vsel %vm584_vm1, %v572_v3, 0  ;;  %v1068_v13 = vld [vmem:[%s1637_s2] ss:$0 sm:$0xff]  ;;  %v643_v18 = vld [vmem:[%s1638_s5 + $0x8] sm:$0xff]  ;;  %v644_v23 = vld [vmem:[%s1638_s5 + $0x10] sm:$0xff] }
  0x1e   : > { %1116 = vmatpush3.bf16.msra.mxu0 %v586_v5  ;;  %v642_v17 = vld [vmem:[%s1638_s5] sm:$0xff]  ;;  %v645_v24 = vld [vmem:[%s1638_s5 + $0x18] sm:$0xff]  ;;  %s1564_s5 = scalar_lea.hbm %s1624_s17, %s1093_s1  ;;  %s1303_s8 = smov [#allocation3]  }
  0x1f   : > { %s1066_s23 = sshll.u32 %s543_s22, 3  ;;  %1160 = vmatprep.subr.bf16.mxu0 %v1302_v6  ;;  %v1161_v21 = vpack.c.bf16 %v643_v18, %v642_v17  ;;  %v1164_v26 = vpack.c.bf16 %v645_v24, %v644_v23  ;;  %v1069_v47 = vld [vmem:[%s1639_s4] ss:$0 sm:$0xff]  ;;  %v1219_v23 = vld [vmem:[%s1620_s13 + $0x38] sm:$0xff]  }
  0x20   : > { %s545_s18 = scalar_lea.vmem %s1634_s0, %s1066_s23  ;;  %s1636_s23 = sld [smem:[#allocation8_spill]]  ;;  %v1210_v5 = vld [vmem:[%s1618_s11] sm:$0xff]  }
  0x21   : > { %v1450_v1 = vld [vmem:[%s545_s18] sm:$0xff] }
  0x22   : > { %v549_v2 = vsel %vm548_vm0, %v1450_v1, 0.0  ;;  %v1076_v18 = vld [vmem:[%s1617_s10] ss:$0 sm:$0xff] }
  0x23   : > { %550 = vadd.xlane.f32.xlu0 %v549_v2  ;;  %v634_v7 = vrot.slane %v549_v2, 4  ;;  %v1077_v24 = vld [vmem:[%s1619_s12] ss:$0 sm:$0xff] }
  0x25   : > { %v635_v8 = vadd.f32 %v634_v7, %v549_v2  ;;  %v1213_v7 = vld [vmem:[%s1620_s13 + $0x8] sm:$0xff]  }
  0x26   : > { %v1067_v10 = vld [vmem:[%s1636_s23] ss:$0 sm:$0xff] }
  0x27   : > { %v636_v9 = vrot.slane %v635_v8, 2 }
  0x29   : > { %v637_v14 = vadd.f32 %v636_v9, %v635_v8  ;;  %v1214_v8 = vld [vmem:[%s1620_s13 + $0x10] sm:$0xff]   ;;  %v1215_v9 = vld [vmem:[%s1620_s13 + $0x18] sm:$0xff]  }
  0x2b   : > { %v638_v19 = vrot.slane %v637_v14, 1 }
  0x2d   : > { %v639_v25 = vadd.f32 %v638_v19, %v637_v14 }
  0x2f   : > { %v641_v27 = vmul.f32 0.125, %v639_v25 }
  0xb0   : > { %v551_v11 = vpop.xlane.xlu0 %550 }
  0xb1   : > { %v553_v12 = vmul.f32 0.03125, %v551_v11  ;;  %v1217_v11 = vld [vmem:[%s1620_s13 + $0x28] sm:$0xff]  }
  0xb3   : > { %v561_v15 = vmul.f32 %v1067_v10, %v553_v12  ;;  %v1216_v10 = vld [vmem:[%s1620_s13 + $0x20] sm:$0xff]  }
  0xb5   : > { %v569_v16 = vadd.f32 %v1068_v13, %v561_v15 }
  0xb7   : > { %v570_v20 = vmax.f32 %v569_v16, 0.0  ;;  %v1075_v16 = vld [vmem:[%s1616_s9] ss:$0 sm:$0xff] }
  0xb9   : > { %v571_v22 = vpack.c.bf16 %v570_v20, %v570_v20 }
  0xbb   : > { %1118 = vmatmul.mubr.msk.bf16.vlgmr.msra.gmra.mrb[0].mxu0 %vm580_vm3, %v571_v22  ;;  %v1218_v22 = vld [vmem:[%s1620_s13 + $0x30] sm:$0xff]  }
  0xbc   : > { %1162 = vmatpush3.bf16.msra.mxu0 %v1161_v21  ;;  %1129 = vmatprep.mubr.msk.f32.mxu0 %vm1301_vm2, %v1300_v4 }
  0xbd   : > { %1163 = vmatprep.subr.bf16.mxu0 %v1302_v6  ;;  %v1212_v6 = vld [vmem:[%s1620_s13] sm:$0xff]  }
  0xbe   : > { %1141 = vmatpush3.bf16.msra.mxu1 %v1212_v6 }
  0xbf   : > { %1142 = vmatprep.subr.bf16.mxu1 %v1300_v4 }
  0xc0   : > { %1165 = vmatpush3.bf16.msra.mxu0 %v1164_v26 }
  0xc1   : > { %1132 = vmatprep.subr.bf16.mxu0 %v1300_v4 }
  0xc2   : > { %1143 = vmatpush3.bf16.msra.mxu1 %v1213_v7 }
  0xc3   : > { %1130 = vmatmul.mubr.msk.f32.vlgmr.msra.gmra.mrb[4].mxu0 %vm548_vm0, %v641_v27  ;;  %1144 = vmatprep.subr.bf16.mxu1 %v1300_v4 }
  0xc4   : > { %1136 = vmatprep.mubr.msk.bf16.mxu0 %vm1301_vm2, %v1300_v4  ;;  %1133 = vmatpush3.bf16.msra.mxu0 %v1210_v5 }
  0xc5   : > { %1134 = vmatprep.subr.bf16.mxu0 %v1300_v4 }
  0xc6   : > { %1145 = vmatpush3.bf16.msra.mxu1 %v1214_v8 }
  0xc7   : > { %1146 = vmatprep.subr.bf16.mxu1 %v1300_v4 }
  0xca   : > { %1147 = vmatpush3.bf16.msra.mxu1 %v1215_v9 }
  0xcb   : > { %1148 = vmatprep.subr.bf16.mxu1 %v1300_v4 }
  0xce   : > { %1149 = vmatpush3.bf16.msra.mxu1 %v1216_v10 }
  0xcf   : > { %1150 = vmatprep.subr.bf16.mxu1 %v1300_v4 }
  0xd2   : > { %1151 = vmatpush3.bf16.msra.mxu1 %v1217_v11 }
  0xd3   : > { %1152 = vmatprep.subr.bf16.mxu1 %v1300_v4 }
  0xd6   : > { %1153 = vmatpush3.bf16.msra.mxu1 %v1218_v22 }
  0xd7   : > { %1154 = vmatprep.subr.bf16.mxu1 %v1300_v4  ;;  %v1081_v4 = vld [vmem:[%s1621_s14] ss:$0 sm:$0xff] }
  0xda   : > { %1155 = vmatpush3.bf16.msra.mxu1 %v1219_v23 }
 0x18e   : > { %v622_v28 = vpop.f32.mrb[0].mxu0 }
 0x18f   : > { %v1119_v29 = vpop.f32.mrb[1].mxu0  ;;  %v623_v48 = vadd.f32 %v1069_v47, %v622_v28 }
 0x190   : > { %v625_v30 = vpop.f32.mrb[2].mxu0 }
 0x191   : > { %v1120_v31 = vpop.f32.mrb[3].mxu0  ;;  %v1071_v49 = vmul.f32 -1.442695, %v623_v48  ;;  %v1090_v48 = vld [vmem:[%s1622_s15] ss:$0 sm:$0xff] }
 0x196   : > { %v716_v33 = vpop.f32.mrb[4].mxu0 }
 0x197   : > { %v717_v34 = vadd.f32 %v716_v33, %v646_v32  ;;  %v1131_v35 = vpop.f32.mrb[5].mxu0 }
 0x199   : > { %v720_v37 = vmax.f32 %v717_v34, 0.0 }
 0x19b   : > { %v722_v38 = vmul.f32 %v721_v36, %v720_v37 }
 0x19d   : > { %v724_v39 = vsel %vm723_vm4, %v722_v38, 0.0 }
 0x19e   : > { %725 = vadd.xlane.f32.xlu0 %v724_v39 }
 0x22b   : > { %v726_v41 = vpop.xlane.xlu0 %725 }
 0x22c   : > { %v728_v42 = vadd.f32 %v727_v40, %v726_v41 }
 0x22e   : > { %v1073_v43 = vmul.f32 -1.442695, %v728_v42 }
 0x230   : > { %1220 = vpow2.f32 %v1073_v43 }
 0x23a   : > { %v1221_v44 = vpop.eup %1220 }
 0x23b   : > { %v732_v45 = vadd.f32 1.0, %v1221_v44 }
 0x23d   : > { %1222 = vrcp.f32 %v732_v45 }
 0x23e   : > { %1224 = vpow2.f32 %v1071_v49 }
 0x247   : > { %v1223_v46 = vpop.eup %1222 }
 0x248   : > { %1166 = vpush %v1223_v46  ;;  %v1225_v50 = vpop.eup %1224 }
 0x249   : > { %v631_v51 = vadd.f32 1.0, %v1225_v50  ;;  %v1091_v50 = vld [vmem:[%s1623_s16] ss:$0 sm:$0xff] }
 0x24b   : > { %1226 = vrcp.f32 %v631_v51 }
 0x255   : > { %v1227_v52 = vpop.eup %1226 }
 0x279   : > { %s1167_s22 = spop %1166 }
 0x27a   : > { %v737_v53 = vstv %s1167_s22  ;;  %s541_s22 = scalar_lea.vmem [#allocation3], %s1065_s3  ;;  %s1240_s3 = sshll.u32 %s1303_s8, 4  ;;  %s1241_s3 = int_to_ptr.vmem [resolvable:$false] %s1240_s3 }
 0x27b   : > { %v739_v54 = vadd.f32 %v1227_v52, %v737_v53  ;;  %s1002_s23 = sshll.u32 %s541_s22, 4  ;;  %s1242_s18 = scalar_lea.vmem %s1241_s3, 256  ;;  %s1566_s23 = int_to_ptr.vmem [resolvable:$true] %s1002_s23 }
 0x27c   : > { %s1236_s0 = scalar_lea.vmem %s1566_s23, 128  ;;  %p1243_p0 = scmp.lt.s32.totalorder %s1566_s23, %s1241_s3 }
 0x27d   : > { %v1074_v55 = vmul.f32 -1.442695, %v739_v54  ;;  %p1237_p11 = scmp.ne.s32.totalorder %s1566_s23, %s1236_s0  ;;  %p1244_p1 = scmp.lt.s32.totalorder %s1242_s18, %s1236_s0 }
 0x27f   : > { %1228 = vpow2.f32 %v1074_v55  ;;  %p1238_p12 = pnand %p1237_p11, %p1435_p5  ;;  %p1245_p2 = por %p1244_p1, %p1243_p0 }
 0x281   : > { %p1239_p13 = pneg %p1238_p12 }
 0x283   : > { %p1246_p3 = pnand %p1245_p2, %p1239_p13 }
 0x289   : > { %v1229_v56 = vpop.eup %1228 }
 0x28a   : > { %v743_v57 = vadd.f32 1.0, %v1229_v56 }
 0x28c   : > { %1230 = vrcp.f32 %v743_v57 }
 0x296   : > { %v1231_v58 = vpop.eup %1230 }
 0x297   : > { %v746_v59 = vmul.f32 %v1231_v58, %v1450_v1 }
 0x299   : > { %v747_v60 = vadd.f32 %v746_v59, %v1450_v1  ;;  %v1211_v1 = vld [vmem:[%s1618_s11 + $0x8] sm:$0xff]  }
 0x29a   : > { %1135 = vmatpush3.bf16.msra.mxu0 %v1211_v1 }
 0x29b   : > { %v748_v61 = vsel %vm548_vm0, %v747_v60, 0.0 }
 0x29c   : > { %749 = vadd.xlane.f32.xlu1 %v748_v61 }
 0x329   : > { %v750_v62 = vpop.xlane.xlu1 %749 }
 0x32a   : > { %v751_v63 = vmul.f32 0.03125, %v750_v62 }
 0x32c   : > { %v752_v0 = vsub.f32 %v747_v60, %v751_v63 }
 0x32e   : > { %v753_v2 = vmul.f32 %v752_v0, %v752_v0 }
 0x330   : > { %v754_v3 = vsel %vm548_vm0, %v753_v2, 0.0 }
 0x331   : > { %755 = vadd.xlane.f32.xlu1 %v754_v3 }
 0x3be   : > { %v756_v12 = vpop.xlane.xlu1 %755 }
 0x3bf   : > { %v757_v13 = vmul.f32 0.03125, %v756_v12 }
 0x3c1   : > { %v758_v14 = vadd.f32 1e-05, %v757_v13 }
 0x3c3   : > { %1232 = vrsqrt.f32 %v758_v14 }
 0x3cd   : > { %v1233_v15 = vpop.eup %1232 }
 0x3ce   : > { %v760_v17 = vmul.f32 %v1233_v15, %v752_v0 }
 0x3d0   : > { %v768_v19 = vmul.f32 %v1075_v16, %v760_v17 }
 0x3d2   : > { %v776_v20 = vadd.f32 %v1076_v18, %v768_v19 }
 0x3d4   : > { %v777_v21 = vpack.c.bf16 %v776_v20, %v776_v20 }
 0x3d6   : > { %1137 = vmatmul.mubr.msk.bf16.vlgmr.msra.gmra.mrb[8].mxu0 %vm548_vm0, %v777_v21 }
 0x4a9   : > { %v838_v25 = vpop.f32.mrb[8].mxu0 }
 0x4aa   : > { %v839_v26 = vadd.f32 %v1077_v24, %v838_v25  ;;  %v1138_v27 = vpop.f32.mrb[9].mxu0 }
 0x4ab   : > { %v841_v28 = vpop.f32.mrb[10].mxu0 }
 0x4ac   : > { %v844_v29 = vmax.f32 %v839_v26, 0.0  ;;  %v1139_v30 = vpop.f32.mrb[11].mxu0 }
 0x4ae   : > { %v845_v31 = vpack.c.bf16 %v844_v29, %v844_v29 }
 0x4b0   : > { %1157 = vmatmul.mubr.bf16.vlgmr.msra.gmra.mrb[0].mxu1 %v845_v31 }
 0x583   : > { %v951_v32 = vpop.f32.mrb[0].mxu1 }
 0x584   : > { %v952_v33 = vadd.f32 %v1081_v4, %v951_v32  ;;  %v1158_v34 = vpop.f32.mrb[1].mxu1 }
 0x585   : > { %v954_v35 = vpop.f32.mrb[2].mxu1 }
 0x586   : > { %v1159_v36 = vpop.f32.mrb[3].mxu1  ;;  %v957_v37 = vadd.f32 %v952_v33, %v776_v20 }
 0x588   : > { %v958_v38 = vsel %vm548_vm0, %v957_v37, 0.0 }
 0x589   : > { %959 = vadd.xlane.f32.xlu0 %v958_v38 }
 0x616   : > { %v960_v39 = vpop.xlane.xlu0 %959 }
 0x617   : > { %v961_v40 = vmul.f32 0.03125, %v960_v39 }
 0x619   : > { %v962_v41 = vsub.f32 %v957_v37, %v961_v40 }
 0x61b   : > { %v963_v42 = vmul.f32 %v962_v41, %v962_v41 }
 0x61d   : > { %v964_v43 = vsel %vm548_vm0, %v963_v42, 0.0 }
 0x61e   : > { %965 = vadd.xlane.f32.xlu1 %v964_v43 }
 0x6ab   : > { %v966_v44 = vpop.xlane.xlu1 %965 }
 0x6ac   : > { %v967_v45 = vmul.f32 0.03125, %v966_v44 }
 0x6ae   : > { %v968_v46 = vadd.f32 1e-05, %v967_v45 }
 0x6b0   : > { %1234 = vrsqrt.f32 %v968_v46 }
 0x6ba   : > { %v1235_v47 = vpop.eup %1234 }
 0x6bb   : > { %v970_v49 = vmul.f32 %v1235_v47, %v962_v41 }
 0x6bd   : > { %v978_v51 = vmul.f32 %v1090_v48, %v970_v49 }
 0x6bf   : > { %v986_v52 = vadd.f32 %v1091_v50, %v978_v51 }
 0x6c1   : > { %987 = vst.msk [vmem:[%s541_s22] sm:$0xff] %vm548_vm0, %v986_v52 }
 0x6c2   : > { %1249 = shalt.err (!%p1246_p3)
}
 0x6c3   : > { %s1250_s2 = scalar_lea.hbm %s1564_s5, 128  ;;  %s1254_s19 = scalar_lea.hbm %s1624_s17, 256 }
 0x6c4   : > { %p1251_p4 = scmp.ne.s32.totalorder %s1564_s5, %s1250_s2  ;;  %p1255_p9 = scmp.lt.u32.totalorder %s1564_s5, %s1624_s17 }
 0x6c5   : > { %p1256_p10 = scmp.lt.u32.totalorder %s1254_s19, %s1250_s2  ;;  %p1258_p12 = scmp.lt.u32.totalorder %s1250_s2, %s1564_s5 }
 0x6c6   : > { %p1252_p7 = pnand %p1251_p4, %p1435_p5 }
 0x6c7   : > { %p1257_p11 = por %p1256_p10, %p1255_p9 }
 0x6c8   : > { %p1253_p8 = pneg %p1252_p7 }
 0x6c9   : > { %p1259_p13 = por %p1258_p12, %p1257_p11 }
 0x6cb   : > { %p1260_p0 = pnand %p1259_p13, %p1253_p8 }
 0x6cd   : > { %1263 = shalt.err (!%p1260_p0)
}
 0x6ce   : > { %1168 = dma.vmem_to_hbm [thread:$0]  (%p1435_p5), %s1566_s23, 128, %s1564_s5, %s989_s25  }
 0x6cf PF: > { %p1174_p1 = scmp.ge.s32.totalorder %s1298_s29, 2  ;;  %s1014_s0 = sand.u32 1, %s1286_s26  }
 0x6d0   : > { %s1015_s8 = scalar_lea.sflag [#allocation4], %s1014_s0 }
 0x6d1   : > { %p1171_p2 = pnand %p1174_p1, %p1439_p6 }
 0x6d3   : > { %1281 = dma.done.wait (!%p1171_p2), %s1015_s8, 128  }
 0x6d4   : > { %1283 = vsyncadd (!%p1171_p2), %s1015_s8, 4294967168  ;;  %s1640_s3 = sld [smem:[#allocation6_spill]]  ;;  %p29_p3 = scmp.ge.s32.totalorder %s1422_s30, 4  }
 0x6d5   : > { %s1641_s26 = smov %s1290_s27  ;;  %s1642_s27 = smov %s1294_s28 }
 0x6d6   : > { %s1644_s29 = smov %s1422_s30  ;;  %31 = sbr.rel (!%p29_p3) target bundleno = 10 (0xa), region = 123 }
 0x6da   : > { %s1643_s28 = smov %s1640_s3 }
 0x6dd   :  { %1020 = vsyncpa [#allocation4], 1 }
 0x6de   :  { %1022 = vsyncpa [#allocation4 + $0x1], 1 }

</bundles_post_ra>
